<compile_context>
chip_gen: v6e
topology: v6e:2x2x1
jax: 0.10.0
libtpu: 0.0.40
codegen_flags: <defaults>
</compile_context>

<pallas_src>
import functools
import math

import jax
import jax.numpy as jnp
from jax.experimental import pallas as pl
from jax.experimental.pallas import tpu as pltpu


def _l2_normalize(x):
    # F.normalize(x, dim=-1, p=2) == x / max(||x||, 1e-12) == x * rsqrt(max(||x||^2, 1e-24))
    ss = jnp.sum(x * x, axis=-1, keepdims=True)
    return x * jax.lax.rsqrt(jnp.maximum(ss, 1e-24))


def _round_up(x, m):
    return (x + m - 1) // m * m


def _largest_divisor_tile(total, target, align=128):
    """Largest multiple of `align` that divides `total` and is <= max(target, align).
    `total` is always a multiple of `align` here, so this never falls below `align`."""
    cap = max(min(target, total), align)
    for b in range(cap - cap % align, 0, -align):
        if total % b == 0:
            return b
    return total


def _ntxent_rowsum_kernel(row_ref, col_ref, out_ref, *,
                          inv_t, eps, valid_cols, tn, mask_cols):
    j = pl.program_id(1)

    # The output block is resident across the (arbitrary) column axis: use it directly
    # as the [TM, 1] f32 exp-row-sum accumulator (no extra scratch).
    @pl.when(j == 0)
    def _():
        out_ref[...] = jnp.zeros_like(out_ref)

    # Transpose-free "rows @ cols.T": contract the feature dim of both bf16 tiles on the
    # MXU with f32 accumulation.
    logits = jax.lax.dot_general(
        row_ref[...], col_ref[...],
        dimension_numbers=(((1,), (1,)), ((), ())),
        preferred_element_type=jnp.float32)            # [TM, TN] f32

    # 1/T as an f32 scalar multiply on the logits; exp stays in f32 (v5e-safe).
    e = jnp.exp(logits * inv_t)

    if mask_cols:
        # Zero contributions from zero-padded columns (exp(0) == 1 would otherwise leak
        # into every row-sum).  Static Python flag: only emitted when padding exists.
        col_ids = j * tn + jax.lax.broadcasted_iota(jnp.int32, e.shape, 1)
        e = jnp.where(col_ids < valid_cols, e, 0.0)

    out_ref[...] += jnp.sum(e, axis=-1, keepdims=True)

    @pl.when(j == pl.num_programs(1) - 1)
    def _():
        # Module semantics: neg = clamp(row_sum - e, min=eps); emit log(neg + eps).
        neg = jnp.maximum(out_ref[...] - math.e, eps)
        out_ref[...] = jnp.log(neg + eps)


def ntxent_loss(out_1, out_2, temperature=0.5, eps=1e-6, *,
                tm_target=1024, tn_target=512, mxu_dtype=jnp.bfloat16,
                vmem_buffer_budget=40 * 1024 * 1024):
    """NT-Xent loss. out_1, out_2: [N, D]. Returns scalar f32 loss."""
    assert out_1.shape == out_2.shape and out_1.ndim == 2
    n, d = out_1.shape
    two_n = 2 * n
    inv_t = 1.0 / float(temperature)

    # --- cheap O(N*D) prep in plain JAX (fused by XLA) ------------------------------
    o1 = _l2_normalize(out_1.astype(jnp.float32))
    o2 = _l2_normalize(out_2.astype(jnp.float32))

    # Positive term: log(pos) == dot(o1n, o2n) / T exactly; subtract it outside the
    # kernel, so no `pair` stream / extra VMEM tile is needed.
    pos_logit = jnp.sum(o1 * o2, axis=-1) * inv_t           # [N]
    pos_logit = jnp.concatenate([pos_logit, pos_logit], 0)  # [2N]

    out = jnp.concatenate([o1, o2], axis=0).astype(mxu_dtype)  # [2N, D] in MXU dtype

    # Pad rows and features to multiples of 128 (lane/MXU alignment on v5e/v6e/v7x).
    p = _round_up(two_n, 128)
    d_pad = _round_up(d, 128)
    out_p = jnp.pad(out, ((0, p - two_n), (0, d_pad - d)))     # [P, Dp]

    # --- tile selection under a v7x-safe VMEM budget ---------------------------------
    dtype_bytes = jnp.dtype(mxu_dtype).itemsize
    tm = _largest_divisor_tile(p, tm_target)
    tn = _largest_divisor_tile(p, tn_target)

    def _need(tm_, tn_):
        # double-buffered row + column tiles + resident f32 output block (x2 buffers)
        return 2 * (tm_ + tn_) * d_pad * dtype_bytes + 2 * tm_ * 4

    while _need(tm, tn) > vmem_buffer_budget and (tm > 128 or tn > 128):
        if tm >= tn and tm > 128:
            tm = _largest_divisor_tile(p, tm // 2)
        else:
            tn = _largest_divisor_tile(p, tn // 2)

    grid = (p // tm, p // tn)
    vmem_limit = int(min(max(int(1.5 * _need(tm, tn)) + (4 << 20), 32 << 20), 48 << 20))

    kernel = functools.partial(
        _ntxent_rowsum_kernel,
        inv_t=inv_t, eps=float(eps),
        valid_cols=two_n, tn=tn, mask_cols=(p != two_n))

    log_neg = pl.pallas_call(
        kernel,
        out_shape=jax.ShapeDtypeStruct((p, 1), jnp.float32),
        grid_spec=pltpu.PrefetchScalarGridSpec(
            num_scalar_prefetch=0,
            grid=grid,
            in_specs=[
                pl.BlockSpec((tm, d_pad), lambda i, j: (i, 0)),  # row tile (resident over j)
                pl.BlockSpec((tn, d_pad), lambda i, j: (j, 0)),  # streaming column tile
            ],
            out_specs=pl.BlockSpec((tm, 1), lambda i, j: (i, 0)),
        ),
        compiler_params=pltpu.CompilerParams(
            dimension_semantics=("parallel", "arbitrary"),
            vmem_limit_bytes=vmem_limit,
        ),
    )(out_p, out_p)

    # Drop padded rows; per-row loss = log(neg + eps) - log(pos); trivial final mean.
    return jnp.mean(log_neg[:two_n, 0] - pos_logit)


def _ntxent_loss_ref(out_1, out_2, temperature=0.5, eps=1e-6):
    """Pure-JAX f32 reference mirroring the PyTorch forward exactly."""
    def l2n(x):
        norm = jnp.sqrt(jnp.sum(x * x, axis=-1, keepdims=True))
        return x / jnp.maximum(norm, 1e-12)
    o1, o2 = l2n(out_1), l2n(out_2)
    out = jnp.concatenate([o1, o2], axis=0)
    cov = out @ out.T
    sim = jnp.exp(cov / temperature)
    neg = jnp.maximum(jnp.sum(sim, axis=-1) - math.e, eps)
    pos = jnp.exp(jnp.sum(o1 * o2, axis=-1) / temperature)
    pos = jnp.concatenate([pos, pos], axis=0)
    return -jnp.mean(jnp.log(pos / (neg + eps)))


if __name__ == "__main__":
    # NtXentLoss has no parameters; deterministic small example inputs.
    key = jax.random.PRNGKey(0)
    k1, k2, k3, k4 = jax.random.split(key, 4)

    # Case 1: batch=8, hidden=32 -> 2N=16 rows (padded to 128), single-tile grid.
    out_1 = jax.random.normal(k1, (8, 32), dtype=jnp.float32)
    out_2 = jax.random.normal(k2, (8, 32), dtype=jnp.float32)
    ref = _ntxent_loss_ref(out_1, out_2)

    loss = jax.jit(ntxent_loss)(out_1, out_2)
    loss = jax.block_until_ready(loss)
    assert jnp.isfinite(loss), "loss is not finite"
    assert abs(float(loss) - float(ref)) < 2e-2, (float(loss), float(ref))

    # f32-MXU variant for a tight numerical check against the reference.
    loss_f32 = jax.jit(functools.partial(ntxent_loss, mxu_dtype=jnp.float32))(out_1, out_2)
    loss_f32 = jax.block_until_ready(loss_f32)
    assert abs(float(loss_f32) - float(ref)) < 1e-4, (float(loss_f32), float(ref))

    # Case 2: batch=96, hidden=64 -> 2N=192 (padded to 256); small tile targets force a
    # 2x2 grid, exercising the accumulator init/finalize, the parallel row axis, and the
    # padded-column masking.
    out_1b = jax.random.normal(k3, (96, 64), dtype=jnp.float32)
    out_2b = jax.random.normal(k4, (96, 64), dtype=jnp.float32)
    ref_b = _ntxent_loss_ref(out_1b, out_2b)
    loss_b = jax.jit(functools.partial(ntxent_loss, tm_target=128, tn_target=128))(out_1b, out_2b)
    loss_b = jax.block_until_ready(loss_b)
    assert jnp.isfinite(loss_b), "loss is not finite"
    assert abs(float(loss_b) - float(ref_b)) < 2e-2, (float(loss_b), float(ref_b))

    print("KERNEL_OK")
</pallas_src>

<mosaic_0001>
module attributes {stable_mosaic.version = 11 : i64} {
  func.func @_ntxent_rowsum_kernel(%arg0: i32, %arg1: i32, %arg2: memref<128x128xbf16, #tpu.memory_space<vmem>>, %arg3: memref<128x128xbf16, #tpu.memory_space<vmem>>, %arg4: memref<128x1xf32, #tpu.memory_space<vmem>>) attributes {dimension_semantics = [#tpu.dimension_semantics<parallel>, #tpu.dimension_semantics<arbitrary>], iteration_bounds = array<i64: 1, 1>, scalar_prefetch = 0 : i64, scratch_operands = 0 : i64, tpu.core_type = #tpu.core_type<tc>, window_params = [{transform_indices = @transform_0, window_bounds = array<i64: 128, 128>}, {transform_indices = @transform_1, window_bounds = array<i64: 128, 128>}, {transform_indices = @transform_2, window_bounds = array<i64: 128, 1>}]} {
    %c0_i32 = arith.constant 0 : i32
    %0 = arith.cmpi eq, %arg1, %c0_i32 : i32
    %1 = arith.extui %0 : i1 to i32
    %c0_i32_0 = arith.constant 0 : i32
    %2 = arith.cmpi ne, %1, %c0_i32_0 : i32
    scf.if %2 {
      %cst_13 = arith.constant 0.000000e+00 : f32
      %25 = vector.broadcast %cst_13 : f32 to vector<128x1xf32>
      %c0_14 = arith.constant 0 : index
      %c0_15 = arith.constant 0 : index
      %26 = vector.load %arg4[%c0_14, %c0_15] : memref<128x1xf32, #tpu.memory_space<vmem>>, vector<128x1xf32>
      tpu.vector_store %arg4[%c0_14, %c0_15], %25 {strides = array<i32>} : memref<128x1xf32, #tpu.memory_space<vmem>>, vector<128x1xf32>,
    } else {
    }
    %c0 = arith.constant 0 : index
    %c0_1 = arith.constant 0 : index
    %3 = vector.load %arg2[%c0, %c0_1] : memref<128x128xbf16, #tpu.memory_space<vmem>>, vector<128x128xbf16>
    %c0_2 = arith.constant 0 : index
    %c0_3 = arith.constant 0 : index
    %4 = vector.load %arg3[%c0_2, %c0_3] : memref<128x128xbf16, #tpu.memory_space<vmem>>, vector<128x128xbf16>
    %cst = arith.constant dense<0.000000e+00> : vector<128x128xf32>
    %5 = tpu.matmul %3, %4, %cst {dimension_numbers = #tpu.dot_dimension_numbers<[1], [1], [0], [0], [0, 0, 1, 0], [], []>} : vector<128x128xbf16>, vector<128x128xbf16>, vector<128x128xf32> -> vector<128x128xf32>
    %cst_4 = arith.constant 2.000000e+00 : f32
    %6 = vector.broadcast %cst_4 : f32 to vector<128x128xf32>
    %7 = arith.mulf %5, %6 : vector<128x128xf32>
    %8 = math.exp %7 : vector<128x128xf32>
    %c128_i32 = arith.constant 128 : i32
    %9 = arith.muli %arg1, %c128_i32 : i32
    %10 = tpu.iota {dimensions = array<i32: 1>} : vector<128x128xi32>
    %11 = vector.broadcast %9 : i32 to vector<128x128xi32>
    %12 = arith.addi %11, %10 : vector<128x128xi32>
    %c16_i32 = arith.constant 16 : i32
    %13 = vector.broadcast %c16_i32 : i32 to vector<128x128xi32>
    %14 = arith.cmpi slt, %12, %13 : vector<128x128xi32>
    %cst_5 = arith.constant 0.000000e+00 : f32
    %15 = vector.broadcast %cst_5 : f32 to vector<128x128xf32>
    %16 = arith.select %14, %8, %15 : vector<128x128xi1>, vector<128x128xf32>
    %c0_6 = arith.constant 0 : index
    %c0_7 = arith.constant 0 : index
    %17 = vector.load %arg4[%c0_6, %c0_7] : memref<128x1xf32, #tpu.memory_space<vmem>>, vector<128x1xf32>
    %cst_8 = arith.constant dense<0.000000e+00> : vector<128xf32>
    %18 = vector.multi_reduction <add>, %16, %cst_8 [1] : vector<128x128xf32> to vector<128xf32>
    %19 = vector.shape_cast %18 : vector<128xf32> to vector<128x1xf32>
    %20 = arith.addf %17, %19 : vector<128x1xf32>
    %c0_9 = arith.constant 0 : index
    %c0_10 = arith.constant 0 : index
    %21 = vector.load %arg4[%c0_9, %c0_10] : memref<128x1xf32, #tpu.memory_space<vmem>>, vector<128x1xf32>
    tpu.vector_store %arg4[%c0_9, %c0_10], %20 {strides = array<i32>} : memref<128x1xf32, #tpu.memory_space<vmem>>, vector<128x1xf32>,
    %c0_i32_11 = arith.constant 0 : i32
    %22 = arith.cmpi eq, %arg1, %c0_i32_11 : i32
    %23 = arith.extui %22 : i1 to i32
    %c0_i32_12 = arith.constant 0 : i32
    %24 = arith.cmpi ne, %23, %c0_i32_12 : i32
    scf.if %24 {
      %c0_13 = arith.constant 0 : index
      %c0_14 = arith.constant 0 : index
      %25 = vector.load %arg4[%c0_13, %c0_14] : memref<128x1xf32, #tpu.memory_space<vmem>>, vector<128x1xf32>
      %cst_15 = arith.constant 2.71828175 : f32
      %26 = vector.broadcast %cst_15 : f32 to vector<128x1xf32>
      %27 = arith.subf %25, %26 : vector<128x1xf32>
      %cst_16 = arith.constant 9.99999997E-7 : f32
      %28 = vector.broadcast %cst_16 : f32 to vector<128x1xf32>
      %29 = arith.maximumf %27, %28 : vector<128x1xf32>
      %cst_17 = arith.constant 9.99999997E-7 : f32
      %30 = vector.broadcast %cst_17 : f32 to vector<128x1xf32>
      %31 = arith.addf %29, %30 : vector<128x1xf32>
      %32 = math.log %31 : vector<128x1xf32>
      %c0_18 = arith.constant 0 : index
      %c0_19 = arith.constant 0 : index
      %33 = vector.load %arg4[%c0_18, %c0_19] : memref<128x1xf32, #tpu.memory_space<vmem>>, vector<128x1xf32>
      tpu.vector_store %arg4[%c0_18, %c0_19], %32 {strides = array<i32>} : memref<128x1xf32, #tpu.memory_space<vmem>>, vector<128x1xf32>,
    } else {
    }
    return
  }
  func.func @transform_0(%arg0: i32, %arg1: i32) -> (i32, i32) {
    %c0_i32 = arith.constant 0 : i32
    %c0_i32_0 = arith.constant 0 : i32
    return %arg0, %c0_i32 : i32, i32
  }
  func.func @transform_1(%arg0: i32, %arg1: i32) -> (i32, i32) {
    %c0_i32 = arith.constant 0 : i32
    %c0_i32_0 = arith.constant 0 : i32
    return %arg1, %c0_i32 : i32, i32
  }
  func.func @transform_2(%arg0: i32, %arg1: i32) -> (i32, i32) {
    %c0_i32 = arith.constant 0 : i32
    %c0_i32_0 = arith.constant 0 : i32
    return %arg0, %c0_i32 : i32, i32
  }
}

</mosaic_0001>

<bundles_post_ra>
// kernel: ntxent_loss.1
= control target key start
LH: loop header
LB: loop body
LE: loop exit
PB: predicated region body
PF: predicated region fallthrough
CT: control target
= control target key end

     0   :  { %vm16_vm0 = vcmask 7168   ;;  %v705_v16 = vmov 0.0   ;;  %v307_v36 = vlaneseq  ;;  %s1092_s1 = inlined_call_operand.vmem [shape: bf16[128,128], index: 1, kind: input, shape index: {}, may-alias: {0,1}]   ;;  %s1093_s0 = inlined_call_operand.vmem [shape: bf16[128,128], index: 0, kind: input, shape index: {}, may-alias: {0,1}]   ;;  %s1094_s2 = inlined_call_operand.vmem [shape: f32[128,1], index: 2, kind: output, shape index: {}]  }
   0x1   :  { %v625_v0 = vld [vmem:[%s1092_s1 + $0x38] sm:$0xff]   ;;  %v626_v1 = vld [vmem:[%s1092_s1 + $0x30] sm:$0xff]   ;;  %v627_v2 = vld [vmem:[%s1092_s1 + $0x28] sm:$0xff]   ;;  %27 = vst.msk [vmem:[%s1094_s2 + $0x50] sm:$0xff] %vm16_vm0, %v705_v16 }
   0x2   :  { %576 = vmatprep.subr.bf16.mxu0 %v625_v0  ;;  %608 = vmatprep.subr.bf16.mxu1 %v625_v0  ;;  %v633_v3 = vld [vmem:[%s1093_s0] sm:$0xff]   ;;  %v629_v6 = vld [vmem:[%s1092_s1 + $0x18] sm:$0xff]   ;;  %v630_v7 = vld [vmem:[%s1092_s1 + $0x10] sm:$0xff]   ;;  %17 = vst.msk [vmem:[%s1094_s2] sm:$0xff] %vm16_vm0, %v705_v16  ;;  %v833_v49 = vand.u32 127, %v307_v36 }
   0x3   :  { %577 = vmatpush3.bf16.xpose.msra.mxu0 %v625_v0  ;;  %616 = vmatpush3.bf16.xpose.msra.mxu1 %v625_v0  ;;  %v634_v4 = vld [vmem:[%s1093_s0 + $0x20] sm:$0xff]   ;;  %v631_v8 = vld [vmem:[%s1092_s1 + $0x8] sm:$0xff]   ;;  %v637_v12 = vld [vmem:[%s1093_s0 + $0x10] sm:$0xff]   ;;  %18 = vst.msk [vmem:[%s1094_s2 + $0x8] sm:$0xff] %vm16_vm0, %v705_v16 }
   0x4   :  { %578 = vmatprep.subr.bf16.mxu0 %v626_v1  ;;  %609 = vmatprep.subr.bf16.mxu1 %v626_v1  ;;  %v628_v5 = vld [vmem:[%s1092_s1 + $0x20] sm:$0xff]   ;;  %v635_v10 = vld [vmem:[%s1093_s0 + $0x8] sm:$0xff]   ;;  %v639_v13 = vld [vmem:[%s1093_s0 + $0x30] sm:$0xff]   ;;  %19 = vst.msk [vmem:[%s1094_s2 + $0x10] sm:$0xff] %vm16_vm0, %v705_v16  ;;  %vm311_vm1 = vcmp.lt.s32.totalorder %v833_v49, 16 }
   0x5   :  { %592 = vmatprep.mubr.bf16.mxu0 %v633_v3  ;;  %600 = vmatprep.mubr.bf16.mxu1 %v634_v4  ;;  %v632_v9 = vld [vmem:[%s1092_s1] sm:$0xff]   ;;  %v636_v11 = vld [vmem:[%s1093_s0 + $0x28] sm:$0xff]   ;;  %v638_v14 = vld [vmem:[%s1093_s0 + $0x18] sm:$0xff]   ;;  %20 = vst.msk [vmem:[%s1094_s2 + $0x18] sm:$0xff] %vm16_vm0, %v705_v16 }
   0x6   :  { %v640_v15 = vld [vmem:[%s1093_s0 + $0x38] sm:$0xff]   ;;  %21 = vst.msk [vmem:[%s1094_s2 + $0x20] sm:$0xff] %vm16_vm0, %v705_v16  ;;  %22 = vst.msk [vmem:[%s1094_s2 + $0x28] sm:$0xff] %vm16_vm0, %v705_v16 }
   0x7   :  { %23 = vst.msk [vmem:[%s1094_s2 + $0x30] sm:$0xff] %vm16_vm0, %v705_v16  ;;  %24 = vst.msk [vmem:[%s1094_s2 + $0x38] sm:$0xff] %vm16_vm0, %v705_v16 }
   0x8   :  { %25 = vst.msk [vmem:[%s1094_s2 + $0x40] sm:$0xff] %vm16_vm0, %v705_v16  ;;  %26 = vst.msk [vmem:[%s1094_s2 + $0x48] sm:$0xff] %vm16_vm0, %v705_v16  ;;  %v338_v36 = vld [vmem:[%s1094_s2 + $0x50] sm:$0xff] }
   0x9   :  { %28 = vst.msk [vmem:[%s1094_s2 + $0x58] sm:$0xff] %vm16_vm0, %v705_v16  ;;  %29 = vst.msk [vmem:[%s1094_s2 + $0x60] sm:$0xff] %vm16_vm0, %v705_v16 }
   0xa   :  { %30 = vst.msk [vmem:[%s1094_s2 + $0x68] sm:$0xff] %vm16_vm0, %v705_v16  ;;  %31 = vst.msk [vmem:[%s1094_s2 + $0x70] sm:$0xff] %vm16_vm0, %v705_v16 }
   0xb   :  { %579 = vmatpush3.bf16.xpose.msra.mxu0 %v626_v1  ;;  %617 = vmatpush3.bf16.xpose.msra.mxu1 %v626_v1  ;;  %32 = vst.msk [vmem:[%s1094_s2 + $0x78] sm:$0xff] %vm16_vm0, %v705_v16 }
   0xc   :  { %580 = vmatprep.subr.bf16.mxu0 %v627_v2  ;;  %610 = vmatprep.subr.bf16.mxu1 %v627_v2 }
  0x13   :  { %581 = vmatpush3.bf16.xpose.msra.mxu0 %v627_v2  ;;  %618 = vmatpush3.bf16.xpose.msra.mxu1 %v627_v2 }
  0x14   :  { %582 = vmatprep.subr.bf16.mxu0 %v628_v5  ;;  %611 = vmatprep.subr.bf16.mxu1 %v628_v5 }
  0x1b   :  { %583 = vmatpush3.bf16.xpose.msra.mxu0 %v628_v5  ;;  %619 = vmatpush3.bf16.xpose.msra.mxu1 %v628_v5 }
  0x1c   :  { %584 = vmatprep.subr.bf16.mxu0 %v629_v6  ;;  %612 = vmatprep.subr.bf16.mxu1 %v629_v6 }
  0x23   :  { %585 = vmatpush3.bf16.xpose.msra.mxu0 %v629_v6  ;;  %620 = vmatpush3.bf16.xpose.msra.mxu1 %v629_v6 }
  0x24   :  { %586 = vmatprep.subr.bf16.mxu0 %v630_v7  ;;  %613 = vmatprep.subr.bf16.mxu1 %v630_v7 }
  0x2b   :  { %587 = vmatpush3.bf16.xpose.msra.mxu0 %v630_v7  ;;  %621 = vmatpush3.bf16.xpose.msra.mxu1 %v630_v7 }
  0x2c   :  { %588 = vmatprep.subr.bf16.mxu0 %v631_v8  ;;  %614 = vmatprep.subr.bf16.mxu1 %v631_v8 }
  0x33   :  { %589 = vmatpush3.bf16.xpose.msra.mxu0 %v631_v8  ;;  %622 = vmatpush3.bf16.xpose.msra.mxu1 %v631_v8 }
  0x34   :  { %590 = vmatprep.subr.bf16.mxu0 %v632_v9  ;;  %615 = vmatprep.subr.bf16.mxu1 %v632_v9 }
  0x3b   :  { %591 = vmatpush3.bf16.xpose.msra.mxu0 %v632_v9  ;;  %623 = vmatpush3.bf16.xpose.msra.mxu1 %v632_v9 }
  0x42   :  { %593 = vmatmul.mubr.bf16.vlgmr.msra.gmra.mxu0 %v635_v10  ;;  %601 = vmatmul.mubr.bf16.vlgmr.msra.gmra.mxu1 %v636_v11 }
  0x43   :  { %596 = vmatprep.mubr.bf16.mxu0 %v637_v12  ;;  %604 = vmatprep.mubr.bf16.mxu1 %v639_v13 }
  0x4a   :  { %597 = vmatmul.mubr.bf16.gmra.mxu0 %v638_v14  ;;  %605 = vmatmul.mubr.bf16.gmra.mxu1 %v640_v15 }
 0x102   :  { %v594_v17 = vpop.f32.mrf.mxu0  ;;  %v602_v18 = vpop.f32.mrf.mxu1 }
 0x103   :  { %v260_v19 = vmul.f32 2.0, %v594_v17  ;;  %v268_v20 = vmul.f32 2.0, %v602_v18 }
 0x104   :  { %v195_v21 = vpop.f32.mrf.mxu0  ;;  %v227_v22 = vpop.f32.mrf.mxu1 }
 0x105   :  { %v278_v23 = vmul.f32 1.442695, %v260_v19  ;;  %v294_v24 = vmul.f32 1.442695, %v268_v20  ;;  %v258_v25 = vmul.f32 2.0, %v195_v21  ;;  %v266_v26 = vmul.f32 2.0, %v227_v22 }
 0x106   :  { %v595_v27 = vpop.f32.mrf.mxu0  ;;  %v603_v28 = vpop.f32.mrf.mxu1 }
 0x107   :  { %641 = vpow2.f32 %v278_v23  ;;  %v274_v29 = vmul.f32 1.442695, %v258_v25  ;;  %v261_v30 = vmul.f32 2.0, %v595_v27  ;;  %v269_v31 = vmul.f32 2.0, %v603_v28 }
 0x108   :  { %643 = vpow2.f32 %v294_v24  ;;  %v198_v32 = vpop.f32.mrf.mxu0  ;;  %v230_v33 = vpop.f32.mrf.mxu1  ;;  %v290_v37 = vmul.f32 1.442695, %v266_v26 }
 0x109   :  { %v280_v34 = vmul.f32 1.442695, %v261_v30  ;;  %v267_v35 = vmul.f32 2.0, %v230_v33  ;;  %645 = vpow2.f32 %v274_v29  ;;  %v296_v38 = vmul.f32 1.442695, %v269_v31 }
 0x10a   :  { %v259_v39 = vmul.f32 2.0, %v198_v32  ;;  %v598_v40 = vpop.f32.mrf.mxu0  ;;  %v606_v41 = vpop.f32.mrf.mxu1 }
 0x10b   :  { %647 = vpow2.f32 %v280_v34  ;;  %v292_v44 = vmul.f32 1.442695, %v267_v35  ;;  %v264_v46 = vmul.f32 2.0, %v598_v40  ;;  %v272_v7 = vmul.f32 2.0, %v606_v41  ;;  %v330_v35 = vld [vmem:[%s1094_s2 + $0x10] sm:$0xff]  ;;  %v331_v41 = vld [vmem:[%s1094_s2 + $0x18] sm:$0xff] }
 0x10c   :  { %v211_v42 = vpop.f32.mrf.mxu0  ;;  %v243_v43 = vpop.f32.mrf.mxu1  ;;  %649 = vpow2.f32 %v296_v38  ;;  %v276_v45 = vmul.f32 1.442695, %v259_v39 }
 0x10d   :  { %651 = vpow2.f32 %v290_v37  ;;  %v286_v54 = vmul.f32 1.442695, %v264_v46  ;;  %v262_v55 = vmul.f32 2.0, %v211_v42  ;;  %v270_v63 = vmul.f32 2.0, %v243_v43  ;;  %v328_v42 = vld [vmem:[%s1094_s2] sm:$0xff] }
 0x10e   :  { %v599_v47 = vpop.f32.mrf.mxu0  ;;  %v607_v48 = vpop.f32.mrf.mxu1  ;;  %653 = vpow2.f32 %v292_v44  ;;  %v302_v14 = vmul.f32 1.442695, %v272_v7 }
 0x10f   :  { %v265_v50 = vmul.f32 2.0, %v599_v47  ;;  %655 = vpow2.f32 %v276_v45  ;;  %v282_v62 = vmul.f32 1.442695, %v262_v55  ;;  %v273_v3 = vmul.f32 2.0, %v607_v48  ;;  %v339_v47 = vld [vmem:[%s1094_s2 + $0x58] sm:$0xff]  ;;  %v336_v48 = vld [vmem:[%s1094_s2 + $0x40] sm:$0xff] }
 0x110   :  { %v214_v51 = vpop.f32.mrf.mxu0  ;;  %v246_v56 = vpop.f32.mrf.mxu1  ;;  %v298_v8 = vmul.f32 1.442695, %v270_v63 }
 0x111   :  { %v288_v52 = vmul.f32 1.442695, %v265_v50  ;;  %v263_v53 = vmul.f32 2.0, %v214_v51  ;;  %v271_v60 = vmul.f32 2.0, %v246_v56  ;;  %v304_v11 = vmul.f32 1.442695, %v273_v3 }
 0x113   :  { %657 = vpow2.f32 %v288_v52  ;;  %v284_v59 = vmul.f32 1.442695, %v263_v53  ;;  %v300_v4 = vmul.f32 1.442695, %v271_v60 }
 0x114   :  { %v642_v57 = vpop.eup %641  ;;  %659 = vpow2.f32 %v286_v54  ;;  %v337_v54 = vld [vmem:[%s1094_s2 + $0x48] sm:$0xff] }
 0x115   :  { %v644_v58 = vpop.eup %643  ;;  %v314_v61 = vsel %vm311_vm1, %v642_v57, 0.0  ;;  %661 = vpow2.f32 %v284_v59  ;;  %v329_v57 = vld [vmem:[%s1094_s2 + $0x8] sm:$0xff] }
 0x116   :  { %v322_v0 = vsel %vm311_vm1, %v644_v58, 0.0  ;;  %348 = vadd.xlane.f32.xlu1 %v314_v61  ;;  %v646_v1 = vpop.eup %645  ;;  %663 = vpow2.f32 %v282_v62 }
 0x117   :  { %364 = vadd.xlane.f32.xlu0 %v322_v0  ;;  %v312_v9 = vsel %vm311_vm1, %v646_v1, 0.0  ;;  %665 = vpow2.f32 %v300_v4 }
 0x118   :  { %v648_v2 = vpop.eup %647  ;;  %667 = vpow2.f32 %v298_v8 }
 0x119   :  { %v315_v5 = vsel %vm311_vm1, %v648_v2, 0.0  ;;  %v650_v6 = vpop.eup %649  ;;  %669 = vpow2.f32 %v304_v11  ;;  %v335_v2 = vld [vmem:[%s1094_s2 + $0x38] sm:$0xff] }
 0x11a   :  { %350 = vadd.xlane.f32.xlu1 %v315_v5  ;;  %v652_v10 = vpop.eup %651  ;;  %v323_v12 = vsel %vm311_vm1, %v650_v6, 0.0  ;;  %671 = vpow2.f32 %v302_v14  ;;  %v334_v6 = vld [vmem:[%s1094_s2 + $0x30] sm:$0xff] }
 0x11b   :  { %344 = vadd.xlane.f32.xlu0 %v312_v9  ;;  %v654_v13 = vpop.eup %653  ;;  %v320_v15 = vsel %vm311_vm1, %v652_v10, 0.0 }
 0x11c   :  { %v656_v16 = vpop.eup %655  ;;  %v321_v17 = vsel %vm311_vm1, %v654_v13, 0.0 }
 0x11d   :  { %v313_v19 = vsel %vm311_vm1, %v656_v16, 0.0  ;;  %v333_v16 = vld [vmem:[%s1094_s2 + $0x28] sm:$0xff] }
 0x11e   :  { %366 = vadd.xlane.f32.xlu1 %v323_v12 }
 0x11f   :  { %360 = vadd.xlane.f32.xlu0 %v320_v15 }
 0x120   :  { %v658_v18 = vpop.eup %657 }
 0x121   :  { %v660_v20 = vpop.eup %659  ;;  %v319_v21 = vsel %vm311_vm1, %v658_v18, 0.0 }
 0x122   :  { %362 = vadd.xlane.f32.xlu1 %v321_v17  ;;  %v662_v22 = vpop.eup %661  ;;  %v318_v23 = vsel %vm311_vm1, %v660_v20, 0.0  ;;  %v332_v20 = vld [vmem:[%s1094_s2 + $0x20] sm:$0xff] }
 0x123   :  { %346 = vadd.xlane.f32.xlu0 %v313_v19  ;;  %v664_v24 = vpop.eup %663  ;;  %v317_v25 = vsel %vm311_vm1, %v662_v22, 0.0 }
 0x124   :  { %v666_v26 = vpop.eup %665  ;;  %v316_v27 = vsel %vm311_vm1, %v664_v24, 0.0 }
 0x125   :  { %v668_v28 = vpop.eup %667  ;;  %v325_v29 = vsel %vm311_vm1, %v666_v26, 0.0 }
 0x126   :  { %358 = vadd.xlane.f32.xlu1 %v319_v21  ;;  %v670_v30 = vpop.eup %669  ;;  %v324_v31 = vsel %vm311_vm1, %v668_v28, 0.0 }
 0x127   :  { %356 = vadd.xlane.f32.xlu0 %v318_v23  ;;  %v672_v32 = vpop.eup %671  ;;  %v327_v33 = vsel %vm311_vm1, %v670_v30, 0.0  ;;  %v341_v30 = vld [vmem:[%s1094_s2 + $0x68] sm:$0xff] }
 0x128   :  { %v326_v34 = vsel %vm311_vm1, %v672_v32, 0.0 }
 0x12a   :  { %354 = vadd.xlane.f32.xlu1 %v317_v25 }
 0x12b   :  { %352 = vadd.xlane.f32.xlu0 %v316_v27 }
 0x12e   :  { %370 = vadd.xlane.f32.xlu1 %v325_v29 }
 0x12f   :  { %368 = vadd.xlane.f32.xlu0 %v324_v31 }
 0x132   :  { %374 = vadd.xlane.f32.xlu1 %v327_v33 }
 0x133   :  { %372 = vadd.xlane.f32.xlu0 %v326_v34  ;;  %v340_v34 = vld [vmem:[%s1094_s2 + $0x60] sm:$0xff] }
 0x19f   :  { %v349_v37 = vpop.xlane.xlu1 %348 }
 0x1a0   :  { %v365_v38 = vpop.xlane.xlu0 %364  ;;  %v378_v39 = vadd.f32 %v349_v37, %v330_v35 }
 0x1a1   :  { %v386_v40 = vadd.f32 %v365_v38, %v338_v36 }
 0x1a2   :  { %395 = vst.msk [vmem:[%s1094_s2 + $0x10] sm:$0xff] %vm16_vm0, %v378_v39 }
 0x1a3   :  { %403 = vst.msk [vmem:[%s1094_s2 + $0x50] sm:$0xff] %vm16_vm0, %v386_v40  ;;  %v351_v43 = vpop.xlane.xlu1 %350 }
 0x1a4   :  { %v345_v44 = vpop.xlane.xlu0 %344  ;;  %v379_v45 = vadd.f32 %v351_v43, %v331_v41 }
 0x1a5   :  { %v376_v46 = vadd.f32 %v345_v44, %v328_v42  ;;  %v343_v44 = vld [vmem:[%s1094_s2 + $0x78] sm:$0xff] }
 0x1a6   :  { %396 = vst.msk [vmem:[%s1094_s2 + $0x18] sm:$0xff] %vm16_vm0, %v379_v45 }
 0x1a7   :  { %393 = vst.msk [vmem:[%s1094_s2] sm:$0xff] %vm16_vm0, %v376_v46  ;;  %v367_v49 = vpop.xlane.xlu1 %366 }
 0x1a8   :  { %v361_v50 = vpop.xlane.xlu0 %360  ;;  %v387_v51 = vadd.f32 %v367_v49, %v339_v47 }
 0x1a9   :  { %v414_v52 = vld [vmem:[%s1094_s2 + $0x10] sm:$0xff]  ;;  %v384_v53 = vadd.f32 %v361_v50, %v336_v48 }
 0x1aa   :  { %v422_v55 = vld [vmem:[%s1094_s2 + $0x50] sm:$0xff]  ;;  %v546_v56 = vadd.f32 -2.7182817, %v414_v52  ;;  %404 = vst.msk [vmem:[%s1094_s2 + $0x58] sm:$0xff] %vm16_vm0, %v387_v51 }
 0x1ab   :  { %v554_v58 = vadd.f32 -2.7182817, %v422_v55  ;;  %401 = vst.msk [vmem:[%s1094_s2 + $0x40] sm:$0xff] %vm16_vm0, %v384_v53  ;;  %v363_v59 = vpop.xlane.xlu1 %362  ;;  %v342_v48 = vld [vmem:[%s1094_s2 + $0x70] sm:$0xff] }
 0x1ac   :  { %v446_v60 = vmax.f32 %v546_v56, 1e-06  ;;  %v385_v61 = vadd.f32 %v363_v59, %v337_v54  ;;  %v347_v62 = vpop.xlane.xlu0 %346 }
 0x1ad   :  { %v454_v63 = vmax.f32 %v554_v58, 1e-06  ;;  %v415_v0 = vld [vmem:[%s1094_s2 + $0x18] sm:$0xff]  ;;  %v377_v1 = vadd.f32 %v347_v62, %v329_v57 }
 0x1ae   :  { %v462_v3 = vadd.f32 1e-06, %v446_v60  ;;  %v412_v4 = vld [vmem:[%s1094_s2] sm:$0xff]  ;;  %v547_v5 = vadd.f32 -2.7182817, %v415_v0  ;;  %402 = vst.msk [vmem:[%s1094_s2 + $0x48] sm:$0xff] %vm16_vm0, %v385_v61 }
 0x1af   :  { %v470_v7 = vadd.f32 1e-06, %v454_v63  ;;  %v544_v8 = vadd.f32 -2.7182817, %v412_v4  ;;  %394 = vst.msk [vmem:[%s1094_s2 + $0x8] sm:$0xff] %vm16_vm0, %v377_v1  ;;  %v359_v9 = vpop.xlane.xlu1 %358 }
 0x1b0   :  { %673 = vlog2.f32 %v462_v3  ;;  %v447_v10 = vmax.f32 %v547_v5, 1e-06  ;;  %v357_v11 = vpop.xlane.xlu0 %356  ;;  %v383_v12 = vadd.f32 %v359_v9, %v335_v2 }
 0x1b1   :  { %675 = vlog2.f32 %v470_v7  ;;  %v444_v13 = vmax.f32 %v544_v8, 1e-06  ;;  %v423_v14 = vld [vmem:[%s1094_s2 + $0x58] sm:$0xff]  ;;  %v382_v15 = vadd.f32 %v357_v11, %v334_v6 }
 0x1b2   :  { %v463_v17 = vadd.f32 1e-06, %v447_v10  ;;  %v420_v18 = vld [vmem:[%s1094_s2 + $0x40] sm:$0xff]  ;;  %v555_v19 = vadd.f32 -2.7182817, %v423_v14  ;;  %400 = vst.msk [vmem:[%s1094_s2 + $0x38] sm:$0xff] %vm16_vm0, %v383_v12 }
 0x1b3   :  { %v460_v21 = vadd.f32 1e-06, %v444_v13  ;;  %v552_v22 = vadd.f32 -2.7182817, %v420_v18  ;;  %399 = vst.msk [vmem:[%s1094_s2 + $0x30] sm:$0xff] %vm16_vm0, %v382_v15  ;;  %v355_v23 = vpop.xlane.xlu1 %354 }
 0x1b4   :  { %677 = vlog2.f32 %v463_v17  ;;  %v455_v24 = vmax.f32 %v555_v19, 1e-06  ;;  %v353_v25 = vpop.xlane.xlu0 %352  ;;  %v381_v26 = vadd.f32 %v355_v23, %v333_v16 }
 0x1b5   :  { %679 = vlog2.f32 %v460_v21  ;;  %v452_v27 = vmax.f32 %v552_v22, 1e-06  ;;  %v421_v28 = vld [vmem:[%s1094_s2 + $0x48] sm:$0xff]  ;;  %v380_v29 = vadd.f32 %v353_v25, %v332_v20 }
 0x1b6   :  { %v471_v31 = vadd.f32 1e-06, %v455_v24  ;;  %v553_v32 = vadd.f32 -2.7182817, %v421_v28  ;;  %v413_v33 = vld [vmem:[%s1094_s2 + $0x8] sm:$0xff]  ;;  %398 = vst.msk [vmem:[%s1094_s2 + $0x28] sm:$0xff] %vm16_vm0, %v381_v26 }
 0x1b7   :  { %v468_v35 = vadd.f32 1e-06, %v452_v27  ;;  %v545_v36 = vadd.f32 -2.7182817, %v413_v33  ;;  %397 = vst.msk [vmem:[%s1094_s2 + $0x20] sm:$0xff] %vm16_vm0, %v380_v29  ;;  %v371_v37 = vpop.xlane.xlu1 %370 }
 0x1b8   :  { %681 = vlog2.f32 %v471_v31  ;;  %v453_v38 = vmax.f32 %v553_v32, 1e-06  ;;  %v369_v39 = vpop.xlane.xlu0 %368  ;;  %v389_v40 = vadd.f32 %v371_v37, %v341_v30 }
 0x1b9   :  { %683 = vlog2.f32 %v468_v35  ;;  %v445_v41 = vmax.f32 %v545_v36, 1e-06  ;;  %v419_v42 = vld [vmem:[%s1094_s2 + $0x38] sm:$0xff]  ;;  %v388_v43 = vadd.f32 %v369_v39, %v340_v34 }
 0x1ba   :  { %v469_v45 = vadd.f32 1e-06, %v453_v38  ;;  %v418_v46 = vld [vmem:[%s1094_s2 + $0x30] sm:$0xff]  ;;  %v551_v47 = vadd.f32 -2.7182817, %v419_v42  ;;  %406 = vst.msk [vmem:[%s1094_s2 + $0x68] sm:$0xff] %vm16_vm0, %v389_v40 }
 0x1bb   :  { %v461_v49 = vadd.f32 1e-06, %v445_v41  ;;  %v550_v50 = vadd.f32 -2.7182817, %v418_v46  ;;  %405 = vst.msk [vmem:[%s1094_s2 + $0x60] sm:$0xff] %vm16_vm0, %v388_v43  ;;  %v375_v51 = vpop.xlane.xlu1 %374 }
 0x1bc   :  { %685 = vlog2.f32 %v469_v45  ;;  %v451_v52 = vmax.f32 %v551_v47, 1e-06  ;;  %v373_v53 = vpop.xlane.xlu0 %372  ;;  %v391_v54 = vadd.f32 %v375_v51, %v343_v44 }
 0x1bd   :  { %v674_v55 = vpop.eup %673  ;;  %687 = vlog2.f32 %v461_v49  ;;  %v450_v56 = vmax.f32 %v550_v50, 1e-06  ;;  %v417_v57 = vld [vmem:[%s1094_s2 + $0x28] sm:$0xff]  ;;  %v390_v58 = vadd.f32 %v373_v53, %v342_v48 }
 0x1be   :  { %v676_v59 = vpop.eup %675  ;;  %v481_v60 = vmul.f32 0.6931472, %v674_v55  ;;  %v467_v61 = vadd.f32 1e-06, %v451_v52  ;;  %v416_v62 = vld [vmem:[%s1094_s2 + $0x20] sm:$0xff]  ;;  %408 = vst.msk [vmem:[%s1094_s2 + $0x78] sm:$0xff] %vm16_vm0, %v391_v54 }
 0x1bf   :  { %v497_v63 = vmul.f32 0.6931472, %v676_v59  ;;  %v466_v0 = vadd.f32 1e-06, %v450_v56  ;;  %v548_v1 = vadd.f32 -2.7182817, %v416_v62 }
 0x1c0   :  { %407 = vst.msk [vmem:[%s1094_s2 + $0x70] sm:$0xff] %vm16_vm0, %v390_v58  ;;  %510 = vst.msk [vmem:[%s1094_s2 + $0x10] sm:$0xff] %vm16_vm0, %v481_v60  ;;  %689 = vlog2.f32 %v467_v61  ;;  %v549_v2 = vadd.f32 -2.7182817, %v417_v57 }
 0x1c1   :  { %v678_v3 = vpop.eup %677  ;;  %518 = vst.msk [vmem:[%s1094_s2 + $0x50] sm:$0xff] %vm16_vm0, %v497_v63  ;;  %691 = vlog2.f32 %v466_v0  ;;  %v448_v4 = vmax.f32 %v548_v1, 1e-06  ;;  %v425_v5 = vld [vmem:[%s1094_s2 + $0x68] sm:$0xff] }
 0x1c2   :  { %v680_v6 = vpop.eup %679  ;;  %v483_v7 = vmul.f32 0.6931472, %v678_v3  ;;  %v449_v8 = vmax.f32 %v549_v2, 1e-06  ;;  %v424_v9 = vld [vmem:[%s1094_s2 + $0x60] sm:$0xff] }
 0x1c3   :  { %v477_v10 = vmul.f32 0.6931472, %v680_v6  ;;  %v464_v11 = vadd.f32 1e-06, %v448_v4  ;;  %v556_v12 = vadd.f32 -2.7182817, %v424_v9 }
 0x1c4   :  { %511 = vst.msk [vmem:[%s1094_s2 + $0x18] sm:$0xff] %vm16_vm0, %v483_v7  ;;  %v465_v13 = vadd.f32 1e-06, %v449_v8  ;;  %v557_v14 = vadd.f32 -2.7182817, %v425_v5 }
 0x1c5   :  { %v682_v15 = vpop.eup %681  ;;  %508 = vst.msk [vmem:[%s1094_s2] sm:$0xff] %vm16_vm0, %v477_v10  ;;  %693 = vlog2.f32 %v464_v11  ;;  %v456_v16 = vmax.f32 %v556_v12, 1e-06  ;;  %v427_v17 = vld [vmem:[%s1094_s2 + $0x78] sm:$0xff] }
 0x1c6   :  { %v684_v18 = vpop.eup %683  ;;  %v499_v19 = vmul.f32 0.6931472, %v682_v15  ;;  %695 = vlog2.f32 %v465_v13  ;;  %v457_v20 = vmax.f32 %v557_v14, 1e-06  ;;  %v559_v26 = vadd.f32 -2.7182817, %v427_v17 }
 0x1c7   :  { %v426_v21 = vld [vmem:[%s1094_s2 + $0x70] sm:$0xff]  ;;  %v493_v22 = vmul.f32 0.6931472, %v684_v18  ;;  %v472_v23 = vadd.f32 1e-06, %v456_v16 }
 0x1c8   :  { %v558_v24 = vadd.f32 -2.7182817, %v426_v21  ;;  %519 = vst.msk [vmem:[%s1094_s2 + $0x58] sm:$0xff] %vm16_vm0, %v499_v19  ;;  %v473_v25 = vadd.f32 1e-06, %v457_v20 }
 0x1c9   :  { %v686_v27 = vpop.eup %685  ;;  %516 = vst.msk [vmem:[%s1094_s2 + $0x40] sm:$0xff] %vm16_vm0, %v493_v22  ;;  %697 = vlog2.f32 %v472_v23  ;;  %v459_v31 = vmax.f32 %v559_v26, 1e-06 }
 0x1ca   :  { %v458_v28 = vmax.f32 %v558_v24, 1e-06  ;;  %v688_v29 = vpop.eup %687  ;;  %v495_v30 = vmul.f32 0.6931472, %v686_v27  ;;  %699 = vlog2.f32 %v473_v25 }
 0x1cb   :  { %v479_v32 = vmul.f32 0.6931472, %v688_v29  ;;  %v475_v34 = vadd.f32 1e-06, %v459_v31 }
 0x1cc   :  { %v474_v33 = vadd.f32 1e-06, %v458_v28  ;;  %517 = vst.msk [vmem:[%s1094_s2 + $0x48] sm:$0xff] %vm16_vm0, %v495_v30 }
 0x1cd   :  { %v690_v35 = vpop.eup %689  ;;  %509 = vst.msk [vmem:[%s1094_s2 + $0x8] sm:$0xff] %vm16_vm0, %v479_v32 }
 0x1ce   :  { %701 = vlog2.f32 %v474_v33  ;;  %v692_v36 = vpop.eup %691  ;;  %v491_v37 = vmul.f32 0.6931472, %v690_v35 }
 0x1cf   :  { %703 = vlog2.f32 %v475_v34  ;;  %v489_v38 = vmul.f32 0.6931472, %v692_v36 }
 0x1d0   :  { %515 = vst.msk [vmem:[%s1094_s2 + $0x38] sm:$0xff] %vm16_vm0, %v491_v37 }
 0x1d1   :  { %514 = vst.msk [vmem:[%s1094_s2 + $0x30] sm:$0xff] %vm16_vm0, %v489_v38 }
 0x1d2   :  { %v694_v39 = vpop.eup %693 }
 0x1d3   :  { %v696_v40 = vpop.eup %695  ;;  %v485_v41 = vmul.f32 0.6931472, %v694_v39 }
 0x1d4   :  { %v487_v42 = vmul.f32 0.6931472, %v696_v40 }
 0x1d5   :  { %512 = vst.msk [vmem:[%s1094_s2 + $0x20] sm:$0xff] %vm16_vm0, %v485_v41 }
 0x1d6   :  { %v698_v43 = vpop.eup %697  ;;  %513 = vst.msk [vmem:[%s1094_s2 + $0x28] sm:$0xff] %vm16_vm0, %v487_v42 }
 0x1d7   :  { %v700_v44 = vpop.eup %699  ;;  %v501_v45 = vmul.f32 0.6931472, %v698_v43 }
 0x1d8   :  { %v503_v46 = vmul.f32 0.6931472, %v700_v44 }
 0x1d9   :  { %520 = vst.msk [vmem:[%s1094_s2 + $0x60] sm:$0xff] %vm16_vm0, %v501_v45 }
 0x1da   :  { %521 = vst.msk [vmem:[%s1094_s2 + $0x68] sm:$0xff] %vm16_vm0, %v503_v46 }
 0x1db   :  { %v702_v47 = vpop.eup %701 }
 0x1dc   :  { %v704_v48 = vpop.eup %703  ;;  %v505_v49 = vmul.f32 0.6931472, %v702_v47 }
 0x1dd   :  { %v507_v50 = vmul.f32 0.6931472, %v704_v48 }
 0x1de   :  { %522 = vst.msk [vmem:[%s1094_s2 + $0x70] sm:$0xff] %vm16_vm0, %v505_v49 }
 0x1df   :  { %523 = vst.msk [vmem:[%s1094_s2 + $0x78] sm:$0xff] %vm16_vm0, %v507_v50 }

</bundles_post_ra>
